<compile_context>
chip_gen: v7x
topology: tpu7x:2x2x1
jax: 0.10.0
libtpu: 0.0.40
codegen_flags: <defaults>
</compile_context>

<pallas_src>
import jax
import jax.numpy as jnp
from jax.experimental import pallas as pl
from jax.experimental.pallas import tpu as pltpu


def _scaled_laplacian(adj):
    """Dense equivalent of convert_adj_sparse + get_laplacian('sym'), lambda_max=2."""
    n = adj.shape[0]
    a_off = adj.astype(jnp.float32) * (1.0 - jnp.eye(n, dtype=jnp.float32))
    deg = a_off.sum(axis=1)
    d_is = jnp.where(deg > 0, jax.lax.rsqrt(deg), 0.0)
    return -(d_is[:, None] * a_off * d_is[None, :])


def _cheb_kernel(x_ref, wbd_ref, acat_ref, w12_ref, o_ref):
    # x_ref   : (N, G*d + 1)    graph-in-lanes packed features; last col = 1.0
    # wbd_ref : (G*d + 1, G*F)  blkdiag(W0 - W2, xG) with the bias row appended
    # acat_ref: (2N, N)         [S ; 2*S@S] stacked (graph-0 propagation ops)
    # w12_ref : (2d, G*F)       [W1 ; W2], zero-padded beyond lane block 0
    # o_ref   : (N, G*F)        lane-dense output slab, written once
    n = acat_ref.shape[1]
    d = w12_ref.shape[0] // 2

    xg = x_ref[...]

    # Base term (+ bias via the ones column) for every graph at once:
    # one lane-dense MXU product -> (N, G*F).
    out = jnp.dot(xg, wbd_ref[...], preferred_element_type=jnp.float32)

    # Graph-0 correction.  x0 lives in lane block 0 of the packed input.
    x0 = xg[:, 0:d]                                                   # (N, d)
    # Single independent MXU push for BOTH propagation products.
    tt = jnp.dot(acat_ref[...], x0, preferred_element_type=jnp.float32)  # (2N, d)
    # (S x0) W1  and  (2 S^2 x0) W2 through zero-padded weights, so the
    # correction adds only into lane block 0 (graph 0 columns).
    out = out + jnp.dot(tt[0:n, :], w12_ref[0:d, :],
                        preferred_element_type=jnp.float32)
    out = out + jnp.dot(tt[n:, :], w12_ref[d:, :],
                        preferred_element_type=jnp.float32)

    o_ref[...] = out.astype(o_ref.dtype)


def cheb_gcn_layer(data, adj, weights, bias):
    """data: (B, T, N, d), adj: (N, N), weights: (K=3, d, F), bias: (F,)."""
    B, T, N, d = data.shape
    K, d_in, F = weights.shape
    assert K == 3 and d_in == d
    G = B * T
    GF = G * F
    f32 = jnp.float32

    w = weights.astype(f32)
    s = _scaled_laplacian(adj)

    # ---- static operator / weight prep (fuses into the surrounding graph) ----
    acat = jnp.concatenate([s, 2.0 * (s @ s)], axis=0)                 # (2N, N)
    wbd = jnp.kron(jnp.eye(G, dtype=f32), w[0] - w[2])                 # (G*d, G*F)
    bt = jnp.tile(bias.astype(f32)[None, :], (1, G))                   # (1, G*F)
    wbd_aug = jnp.concatenate([wbd, bt], axis=0)                       # (G*d+1, G*F)
    w12 = jnp.concatenate(
        [jnp.pad(w[1], ((0, 0), (0, GF - F))),
         jnp.pad(w[2], ((0, 0), (0, GF - F)))], axis=0)                # (2d, G*F)

    # ---- lane-dense packing of the features: graph index -> lanes ----
    # (G, N, d) -> (N, G, d) -> (N, G*d); a few KiB, fuses into the jit graph.
    xg = (data.astype(f32).reshape(G, N, d).transpose(1, 0, 2).reshape(N, G * d))
    xg_aug = jnp.concatenate([xg, jnp.ones((N, 1), dtype=f32)], axis=1)  # (N, G*d+1)

    flops = (2 * N * (G * d + 1) * GF       # base + bias
             + 2 * (2 * N) * N * d          # [S ; 2S^2] @ x0
             + 2 * 2 * N * d * GF)          # correction weight products
    bytes_accessed = 4 * (N * (G * d + 1) + (G * d + 1) * GF
                          + 2 * N * N + 2 * d * GF + N * GF)

    # Grid-less design keeps everything resident in VMEM at once.
    # TODO(synk): for large G*N, switch to a 1-D row-block grid over (G*N, d)
    # with dimension_semantics=("parallel",) (v7x has 2 TCs and only 64 MiB
    # VMEM) instead of this lane-packed single-shot path.
    assert bytes_accessed < 16 * 1024 * 1024, "use the row-block-grid path"

    vmem = lambda: pl.BlockSpec(memory_space=pltpu.MemorySpace.VMEM)
    out_gl = pl.pallas_call(
        _cheb_kernel,
        out_shape=jax.ShapeDtypeStruct((N, GF), f32),
        in_specs=[vmem(), vmem(), vmem(), vmem()],
        out_specs=vmem(),
        cost_estimate=pl.CostEstimate(flops=flops, transcendentals=0,
                                      bytes_accessed=bytes_accessed),
    )(xg_aug, wbd_aug, acat, w12)

    # Unpack lanes back to (B, T, N, F): contiguous reshapes + tiny transpose.
    return out_gl.reshape(N, G, F).transpose(1, 0, 2).reshape(B, T, N, F)


if __name__ == "__main__":
    key = jax.random.PRNGKey(0)
    k1, k2, k3, k4 = jax.random.split(key, 4)

    B, T, N, d, F, K = 2, 3, 16, 8, 32, 3   # in_features=8, out_features=32, K=3
    G = B * T

    data = jax.random.normal(k1, (B, T, N, d), dtype=jnp.float32)

    # deterministic symmetric 0/1 adjacency with zero diagonal
    a = jax.random.uniform(k2, (N, N), dtype=jnp.float32)
    adj = ((a + a.T) > 1.0).astype(jnp.float32)
    adj = adj * (1.0 - jnp.eye(N, dtype=jnp.float32))

    # ChebConv parameters: K linear layers stored pre-transposed as (K, d, F),
    # plus the shared bias (F,).
    weights = 0.1 * jax.random.normal(k3, (K, d, F), dtype=jnp.float32)
    bias = 0.1 * jax.random.normal(k4, (F,), dtype=jnp.float32)

    out = jax.jit(cheb_gcn_layer)(data, adj, weights, bias)
    jax.block_until_ready(out)
    assert out.shape == (B, T, N, F) and out.dtype == jnp.float32

    # Pure-JAX reference of the same semantics (only graph 0 propagates).
    s = _scaled_laplacian(adj)
    x_g = data.reshape(G, N, d).astype(jnp.float32)
    t0 = x_g
    t1 = jnp.zeros_like(t0).at[0].set(s @ x_g[0])
    t2 = 2.0 * jnp.einsum("ij,gjd->gid", s, t1) - t0
    ref = (jnp.einsum("gnd,df->gnf", t0, weights[0])
           + jnp.einsum("gnd,df->gnf", t1, weights[1])
           + jnp.einsum("gnd,df->gnf", t2, weights[2])
           + bias).reshape(B, T, N, F)
    assert jnp.allclose(out, ref, atol=1e-4, rtol=1e-4), \
        float(jnp.max(jnp.abs(out - ref)))

    print("KERNEL_OK")
</pallas_src>

<mosaic_0001>
module attributes {stable_mosaic.version = 11 : i64} {
  func.func @_cheb_kernel(%arg0: memref<16x49xf32, #tpu.memory_space<vmem>>, %arg1: memref<49x192xf32, #tpu.memory_space<vmem>>, %arg2: memref<32x16xf32, #tpu.memory_space<vmem>>, %arg3: memref<16x192xf32, #tpu.memory_space<vmem>>, %arg4: memref<16x192xf32, #tpu.memory_space<vmem>>) attributes {dimension_semantics = [], scalar_prefetch = 0 : i64, scratch_operands = 0 : i64, tpu.core_type = #tpu.core_type<tc>} {
    %c0 = arith.constant 0 : index
    %c0_0 = arith.constant 0 : index
    %0 = vector.load %arg0[%c0, %c0_0] : memref<16x49xf32, #tpu.memory_space<vmem>>, vector<16x49xf32>
    %c0_1 = arith.constant 0 : index
    %c0_2 = arith.constant 0 : index
    %1 = vector.load %arg1[%c0_1, %c0_2] : memref<49x192xf32, #tpu.memory_space<vmem>>, vector<49x192xf32>
    %cst = arith.constant dense<0.000000e+00> : vector<16x192xf32>
    %2 = tpu.matmul %0, %1, %cst {dimension_numbers = #tpu.dot_dimension_numbers<[1], [0], [0], [1], [0, 0, 1, 1], [], []>} : vector<16x49xf32>, vector<49x192xf32>, vector<16x192xf32> -> vector<16x192xf32>
    %3 = vector.extract_strided_slice %0 {offsets = [0, 0], sizes = [16, 8], strides = [1, 1]} : vector<16x49xf32> to vector<16x8xf32>
    %c0_3 = arith.constant 0 : index
    %c0_4 = arith.constant 0 : index
    %4 = vector.load %arg2[%c0_3, %c0_4] : memref<32x16xf32, #tpu.memory_space<vmem>>, vector<32x16xf32>
    %cst_5 = arith.constant dense<0.000000e+00> : vector<32x8xf32>
    %5 = tpu.matmul %4, %3, %cst_5 {dimension_numbers = #tpu.dot_dimension_numbers<[1], [0], [0], [1], [0, 0, 1, 1], [], []>} : vector<32x16xf32>, vector<16x8xf32>, vector<32x8xf32> -> vector<32x8xf32>
    %6 = vector.extract_strided_slice %5 {offsets = [0, 0], sizes = [16, 8], strides = [1, 1]} : vector<32x8xf32> to vector<16x8xf32>
    %c0_6 = arith.constant 0 : index
    %c0_7 = arith.constant 0 : index
    %7 = vector.load %arg3[%c0_6, %c0_7] : memref<16x192xf32, #tpu.memory_space<vmem>>, vector<8x192xf32>
    %cst_8 = arith.constant dense<0.000000e+00> : vector<16x192xf32>
    %8 = tpu.matmul %6, %7, %cst_8 {dimension_numbers = #tpu.dot_dimension_numbers<[1], [0], [0], [1], [0, 0, 1, 1], [], []>} : vector<16x8xf32>, vector<8x192xf32>, vector<16x192xf32> -> vector<16x192xf32>
    %9 = arith.addf %2, %8 : vector<16x192xf32>
    %10 = vector.extract_strided_slice %5 {offsets = [16, 0], sizes = [16, 8], strides = [1, 1]} : vector<32x8xf32> to vector<16x8xf32>
    %c8 = arith.constant 8 : index
    %c0_9 = arith.constant 0 : index
    %11 = vector.load %arg3[%c8, %c0_9] : memref<16x192xf32, #tpu.memory_space<vmem>>, vector<8x192xf32>
    %cst_10 = arith.constant dense<0.000000e+00> : vector<16x192xf32>
    %12 = tpu.matmul %10, %11, %cst_10 {dimension_numbers = #tpu.dot_dimension_numbers<[1], [0], [0], [1], [0, 0, 1, 1], [], []>} : vector<16x8xf32>, vector<8x192xf32>, vector<16x192xf32> -> vector<16x192xf32>
    %13 = arith.addf %9, %12 : vector<16x192xf32>
    %c0_11 = arith.constant 0 : index
    %c0_12 = arith.constant 0 : index
    %14 = vector.load %arg4[%c0_11, %c0_12] : memref<16x192xf32, #tpu.memory_space<vmem>>, vector<16x192xf32>
    tpu.vector_store %arg4[%c0_11, %c0_12], %13 {strides = array<i32>} : memref<16x192xf32, #tpu.memory_space<vmem>>, vector<16x192xf32>,
    return
  }
}

</mosaic_0001>

<bundles_post_ra>
// kernel: cheb_gcn_layer.1
= control target key start
LH: loop header
LB: loop body
LE: loop exit
PB: predicated region body
PF: predicated region fallthrough
CT: control target
= control target key end

     0   :  { %vm37_vm0 = vcmask 130048   ;;  %v463_v12 = vmov 0.0   ;;  %vm137_vm1 = vcmask 64512   ;;  %vm228_vm2 = vcmask 1040384   ;;  %s589_s0 = inlined_call_operand.vmem [shape: f32[16,49], index: 0, kind: input, shape index: {}]   ;;  %s590_s2 = inlined_call_operand.vmem [shape: f32[32,16], index: 2, kind: input, shape index: {}]   ;;  %s591_s3 = inlined_call_operand.vmem [shape: f32[16,192], index: 3, kind: input, shape index: {}]   ;;  %s592_s1 = inlined_call_operand.vmem [shape: f32[49,192], index: 1, kind: input, shape index: {}]   ;;  %s593_s4 = inlined_call_operand.vmem [shape: f32[16,192], index: 4, kind: output, shape index: {}]  }
   0x1   :  { %v492_v0 = vld [vmem:[%s589_s0] sm:$0xff]  ;;  %v497_v1 = vld [vmem:[%s589_s0 + $0x8] sm:$0xff]  ;;  %v35_v6 = vld [vmem:[%s590_s2 + $0x10] sm:$0xff]  ;;  %208 = vmatprep.mubr.f32.mxu1 %v463_v12  ;;  %vm221_vm3 = vcmask 400384   ;;  %vm402_vm4 = vcmask 523264  }
   0x2   :  { %v33_v2 = vld [vmem:[%s590_s2] sm:$0xff]  ;;  %v438_v3 = vpack.c.bf16 %v497_v1, %v492_v0  ;;  %v136_v4 = vld [vmem:[%s591_s3 + $0x8] sm:$0xff]  ;;  %v36_v7 = vld [vmem:[%s590_s2 + $0x18] sm:$0xff] }
   0x3   :  { %432 = vmatprep.mubr.msk.f32.mxu0 %vm37_vm0, %v33_v2  ;;  %144 = vmatprep.subr.mxu1 %v136_v4  ;;  %v34_v5 = vld [vmem:[%s590_s2 + $0x8] sm:$0xff]  ;;  %v22_v9 = vld [vmem:[%s592_s1 + $0x18] sm:$0xff]  ;;  %v135_v10 = vld [vmem:[%s591_s3] sm:$0xff] }
   0x4   :  { %439 = vmatprep.subr.bf16.mxu0 %v438_v3  ;;  %v20_v8 = vld [vmem:[%s592_s1 + $0x8] sm:$0xff]  ;;  %145 = vmatpush1.msra.mxu1 %v135_v10  ;;  %v313_v13 = vld [vmem:[%s591_s3 + $0x18] sm:$0xff]  ;;  %v312_v14 = vld [vmem:[%s591_s3 + $0x10] sm:$0xff] }
   0x5   :  { %441 = vmatpush3.bf16.msra.mxu0 %v438_v3  ;;  %v442_v11 = vpack.c.bf16 %v22_v9, %v20_v8  ;;  %v19_v15 = vld [vmem:[%s592_s1] sm:$0xff]  ;;  %v21_v16 = vld [vmem:[%s592_s1 + $0x10] sm:$0xff]  ;;  %v24_v17 = vld [vmem:[%s592_s1 + $0x28] sm:$0xff] }
   0x6   :  { %320 = vmatprep.subr.mxu0 %v313_v13  ;;  %v26_v18 = vld [vmem:[%s592_s1 + $0x38] sm:$0xff]  ;;  %v444_v19 = vpack.c.bf16 %v21_v16, %v19_v15  ;;  %v23_v22 = vld [vmem:[%s592_s1 + $0x20] sm:$0xff]  ;;  %v25_v23 = vld [vmem:[%s592_s1 + $0x30] sm:$0xff] }
   0x7   :  { %443 = vmatprep.subr.bf16.mxu1 %v442_v11  ;;  %v446_v21 = vpack.c.bf16 %v26_v18, %v24_v17  ;;  %v28_v25 = vld [vmem:[%s592_s1 + $0x48] sm:$0xff]  ;;  %v30_v26 = vld [vmem:[%s592_s1 + $0x58] sm:$0xff]  ;;  %v448_v27 = vpack.c.bf16 %v25_v23, %v23_v22  ;;  %v27_v30 = vld [vmem:[%s592_s1 + $0x40] sm:$0xff] }
   0x8   :  { %433 = vmatmul.mubr.msk.f32.vlgmr.msra.gmra.mrb[0].mxu0 %vm37_vm0, %v34_v5  ;;  %v450_v29 = vpack.c.bf16 %v30_v26, %v28_v25  ;;  %v29_v31 = vld [vmem:[%s592_s1 + $0x50] sm:$0xff]  ;;  %v32_v34 = vld [vmem:[%s592_s1 + $0x68] sm:$0x1]  ;;  %v31_v35 = vld [vmem:[%s592_s1 + $0x60] sm:$0x1] }
   0x9   :  { %435 = vmatprep.mubr.msk.f32.mxu0 %vm37_vm0, %v35_v6  ;;  %321 = vmatpush1.msra.mxu0 %v312_v14  ;;  %v452_v33 = vpack.c.bf16 %v29_v31, %v27_v30 }
   0xc   :  { %436 = vmatmul.mubr.msk.f32.gmra.mrb[2].mxu0 %vm37_vm0, %v36_v7 }
   0xd   :  { %384 = vmatprep.mubr.f32.mxu0 %v463_v12 }
  0xdb   :  { %v434_v20 = vpop.f32.mrb[0].mxu0 }
  0xdc   :  { %v116_v24 = vpop.f32.mrb[1].mxu0 }
  0xdd   :  { %414 = vmatmul.mubr.msk.f32.vlgmr.msra.gmra.mrb[0].mxu1 %vm137_vm1, %v116_v24 }
  0xde   :  { %445 = vmatpush1.bf16.msra.mxu1 %v444_v19  ;;  %214 = vmatprep.mubr.f32.mxu1 %v463_v12 }
  0xdf   :  { %447 = vmatprep.subr.bf16.mxu1 %v446_v21  ;;  %v437_v28 = vpop.f32.mrb[2].mxu0 }
  0xe0   :  { %v126_v32 = vpop.f32.mrb[3].mxu0 }
  0xe1   :  { %415 = vmatmul.mubr.msk.f32.gmra.mrb[2].mxu1 %vm137_vm1, %v434_v20  ;;  %420 = vmatmul.mubr.msk.f32.vlgmr.msra.gmra.mrb[4].mxu0 %vm137_vm1, %v126_v32 }
  0xe2   :  { %449 = vmatpush1.bf16.msra.mxu1 %v448_v27  ;;  %390 = vmatprep.mubr.f32.mxu0 %v463_v12 }
  0xe3   :  { %451 = vmatprep.subr.bf16.mxu1 %v450_v29  ;;  %299 = vmatprep.mubr.f32.mxu1 %v463_v12 }
  0xe5   :  { %421 = vmatmul.mubr.msk.f32.gmra.mrb[6].mxu0 %vm137_vm1, %v437_v28 }
  0xe6   :  { %453 = vmatpush1.bf16.msra.mxu1 %v452_v33 }
  0xe7   :  { %416 = vmatprep.subr.msk.mxu1 %vm228_vm2, %v32_v34 }
  0xea   :  { %417 = vmatpush1.msk.msra.mxu1 %vm228_vm2, %v31_v35 }
  0xeb   :  { %418 = vmatmul.mubr.msk.f32.vlgmr.msra.gmra.mrb[0].mxu1 %vm221_vm3, %v492_v0 }
  0xec   :  { %305 = vmatprep.mubr.f32.mxu1 %v463_v12 }
  0xef   :  { %419 = vmatmul.mubr.msk.f32.gmra.mrb[2].mxu1 %vm221_vm3, %v497_v1 }
 0x1b4   :  { %v386_v36 = vpop.f32.mrb[4].mxu0 }
 0x1b5   :  { %v388_v37 = vpop.f32.mrb[5].mxu0 }
 0x1b8   :  { %v392_v38 = vpop.f32.mrb[6].mxu0 }
 0x1b9   :  { %v394_v39 = vpop.f32.mrb[7].mxu0 }
 0x1be   :  { %v301_v40 = vpop.f32.mrb[0].mxu1 }
 0x1bf   :  { %v454_v41 = vadd.f32 %v386_v36, %v301_v40  ;;  %v303_v42 = vpop.f32.mrb[1].mxu1 }
 0x1c0   :  { %v455_v43 = vadd.f32 %v388_v37, %v303_v42 }
 0x1c1   :  { %401 = vst [vmem:[%s593_s4] sm:$0xff] %v454_v41 }
 0x1c2   :  { %403 = vst.msk [vmem:[%s593_s4 + $0x8] sm:$0xff] %vm402_vm4, %v455_v43  ;;  %v307_v44 = vpop.f32.mrb[2].mxu1 }
 0x1c3   :  { %v456_v45 = vadd.f32 %v392_v38, %v307_v44  ;;  %v309_v46 = vpop.f32.mrb[3].mxu1 }
 0x1c4   :  { %v457_v47 = vadd.f32 %v394_v39, %v309_v46 }
 0x1c5   :  { %404 = vst [vmem:[%s593_s4 + $0x10] sm:$0xff] %v456_v45 }
 0x1c6   :  { %405 = vst.msk [vmem:[%s593_s4 + $0x18] sm:$0xff] %vm402_vm4, %v457_v47 }

</bundles_post_ra>
